<compile_context>
chip_gen: v7x
topology: tpu7x:2x2x1
jax: 0.10.0
libtpu: 0.0.40
codegen_flags: <defaults>
</compile_context>

<pallas_src>
import functools
import math

import jax
import jax.numpy as jnp
from jax.experimental import pallas as pl
from jax.experimental.pallas import tpu as pltpu

EPS = 1e-5
_MIB = 1024 * 1024
# Per-block working-set target: R * F elements.  ~4 MiB of f32 working data per block
# (2-4 MiB native pipelined buffers), which sits in the measured ~85%-of-HBM-roofline
# band for streaming kernels on all generations.
_TARGET_BLOCK_ELEMS = 1024 * 1024


def _round_up(n: int, m: int) -> int:
    return ((n + m - 1) // m) * m


def _sublane_align(itemsize: int) -> int:
    # f32 -> 8, bf16/f16 -> 16, int8/fp8 -> 32 (packed sublane tiles).
    return max(8, 32 // itemsize)


def _vmem_limit(block_elems: int, itemsize: int) -> int:
    # 2x double-buffered (in + out) native blocks + ~4 block-sized f32 temporaries.
    footprint = 4 * block_elems * itemsize + 4 * block_elems * 4
    return int(min(max(footprint + 8 * _MIB, 32 * _MIB), 48 * _MIB))


# --------------------------------------------------------------------------- #
# Main path: whole feature row per block (exact two-pass centered variance).  #
# --------------------------------------------------------------------------- #
def _ln_kernel(x_ref, o_ref, *, inv_f):
    # x_ref / o_ref: (R, F) tile -> R batch rows, all F features per row.
    x = x_ref[...].astype(jnp.float32)
    mean = jnp.sum(x, axis=-1, keepdims=True) * inv_f        # XLU lane reduction
    centered = x - mean
    var = jnp.sum(centered * centered, axis=-1, keepdims=True) * inv_f
    o_ref[...] = (centered * jax.lax.rsqrt(var + EPS)).astype(o_ref.dtype)  # EUP rsqrt


def _choose_rows(batch: int, features: int, align: int):
    """Rows per block, or None if even the minimum row block exceeds the budget."""
    r_min = batch if batch <= align else align
    if r_min * features > _TARGET_BLOCK_ELEMS:
        return None                                   # large-F fallback path
    if batch <= align:
        return batch                                  # full-extent row block (legal)
    r_cap = (_TARGET_BLOCK_ELEMS // features) // align * align   # >= align here
    n_blocks = pl.cdiv(batch, r_cap)
    if n_blocks < 2 and batch >= 2 * align:
        n_blocks = 2                                  # >=2 steps -> both v7x TCs stream
    rows = _round_up(pl.cdiv(batch, n_blocks), align)
    return batch if rows >= batch else rows


# --------------------------------------------------------------------------- #
# Large-F fallback: feature-split two-pass (stats kernel + normalize kernel). #
# --------------------------------------------------------------------------- #
def _stats_kernel(x_ref, mean_ref, rstd_ref, *, inv_f, f_true, f_chunk):
    j = pl.program_id(1)

    @pl.when(j == 0)
    def _():
        mean_ref[...] = jnp.zeros_like(mean_ref)
        rstd_ref[...] = jnp.zeros_like(rstd_ref)

    x = x_ref[...].astype(jnp.float32)
    col = j * f_chunk + jax.lax.broadcasted_iota(jnp.int32, x.shape, 1)
    x = jnp.where(col < f_true, x, 0.0)                  # mask ragged last chunk
    mean_ref[...] += jnp.sum(x, axis=-1, keepdims=True)          # running sum(x)
    rstd_ref[...] += jnp.sum(x * x, axis=-1, keepdims=True)      # running sum(x^2)

    @pl.when(j == pl.num_programs(1) - 1)
    def _():
        m = mean_ref[...] * inv_f
        var = jnp.maximum(rstd_ref[...] * inv_f - m * m, 0.0)
        mean_ref[...] = m
        rstd_ref[...] = jax.lax.rsqrt(var + EPS)


def _norm_kernel(x_ref, mean_ref, rstd_ref, o_ref):
    x = x_ref[...].astype(jnp.float32)
    o_ref[...] = ((x - mean_ref[...]) * rstd_ref[...]).astype(o_ref.dtype)


def _layer_norm_big_f(x2d, itemsize: int, align: int):
    # TODO(synk): fallback uses f32 sum / sum-of-squares accumulation (vs. the centered
    # two-pass of the main path); fine for activation-scale data at very large F.
    B, F = x2d.shape
    R = B if B <= align else align
    Fc = max(128, (_TARGET_BLOCK_ELEMS // R) // 128 * 128)       # < F by construction
    grid = (pl.cdiv(B, R), pl.cdiv(F, Fc))
    vmem = _vmem_limit(R * Fc, itemsize)

    mean, rstd = pl.pallas_call(
        functools.partial(_stats_kernel, inv_f=1.0 / F, f_true=F, f_chunk=Fc),
        out_shape=(jax.ShapeDtypeStruct((B, 1), jnp.float32),
                   jax.ShapeDtypeStruct((B, 1), jnp.float32)),
        grid_spec=pltpu.PrefetchScalarGridSpec(
            num_scalar_prefetch=0,
            grid=grid,
            in_specs=[pl.BlockSpec((R, Fc), lambda i, j: (i, j))],
            out_specs=(pl.BlockSpec((R, 1), lambda i, j: (i, 0)),
                       pl.BlockSpec((R, 1), lambda i, j: (i, 0))),
        ),
        compiler_params=pltpu.CompilerParams(
            dimension_semantics=("parallel", "arbitrary"),
            vmem_limit_bytes=vmem,
        ),
    )(x2d)

    return pl.pallas_call(
        _norm_kernel,
        out_shape=jax.ShapeDtypeStruct((B, F), x2d.dtype),
        grid_spec=pltpu.PrefetchScalarGridSpec(
            num_scalar_prefetch=0,
            grid=grid,
            in_specs=[pl.BlockSpec((R, Fc), lambda i, j: (i, j)),
                      pl.BlockSpec((R, 1), lambda i, j: (i, 0)),
                      pl.BlockSpec((R, 1), lambda i, j: (i, 0))],
            out_specs=pl.BlockSpec((R, Fc), lambda i, j: (i, j)),
        ),
        compiler_params=pltpu.CompilerParams(
            dimension_semantics=("parallel", "parallel"),
            vmem_limit_bytes=vmem,
        ),
    )(x2d, mean, rstd)


# --------------------------------------------------------------------------- #
# Public wrapper                                                              #
# --------------------------------------------------------------------------- #
def simple_layer_norm(x):
    """LayerNorm over all non-batch dims, eps=1e-5, no affine.
    Matches torch.nn.functional.layer_norm(x, x.size()[1:])."""
    orig_shape = x.shape
    B = orig_shape[0]
    F = int(math.prod(orig_shape[1:]))
    x2d = x.reshape(B, F)
    itemsize = jnp.dtype(x.dtype).itemsize
    align = _sublane_align(itemsize)

    R = _choose_rows(B, F, align)
    if R is None:
        out2d = _layer_norm_big_f(x2d, itemsize, align)
    else:
        out2d = pl.pallas_call(
            functools.partial(_ln_kernel, inv_f=1.0 / F),
            out_shape=jax.ShapeDtypeStruct((B, F), x.dtype),
            grid_spec=pltpu.PrefetchScalarGridSpec(
                num_scalar_prefetch=0,
                grid=(pl.cdiv(B, R),),
                in_specs=[pl.BlockSpec((R, F), lambda b: (b, 0))],
                out_specs=pl.BlockSpec((R, F), lambda b: (b, 0)),
            ),
            compiler_params=pltpu.CompilerParams(
                dimension_semantics=("parallel",),
                vmem_limit_bytes=_vmem_limit(R * F, itemsize),
            ),
        )(x2d)

    return out2d.reshape(orig_shape)


def _reference(x):
    xf = x.reshape(x.shape[0], -1).astype(jnp.float32)
    mean = jnp.mean(xf, axis=1, keepdims=True)
    var = jnp.mean((xf - mean) ** 2, axis=1, keepdims=True)
    return ((xf - mean) / jnp.sqrt(var + EPS)).reshape(x.shape).astype(x.dtype)


if __name__ == "__main__":
    key = jax.random.PRNGKey(0)

    # 1) Primary check: shape implied by the module usage (NCHW).
    x = jax.random.normal(key, (2, 4, 16, 16), dtype=jnp.float32)
    out = jax.block_until_ready(simple_layer_norm(x))
    assert out.shape == x.shape and out.dtype == x.dtype
    assert jnp.max(jnp.abs(out - _reference(x))) < 1e-5

    # 2) Ragged feature count (F=105, not a multiple of 128) -> full-extent block,
    #    no wrapper pad/slice.
    x2 = jax.random.normal(jax.random.PRNGKey(0), (3, 3, 5, 7), dtype=jnp.float32)
    out2 = jax.block_until_ready(simple_layer_norm(x2))
    assert out2.shape == x2.shape and out2.dtype == x2.dtype
    assert jnp.max(jnp.abs(out2 - _reference(x2))) < 1e-5

    # 3) Multi-block batch with a partial last block (B=20, R=16 -> 2 grid steps).
    x3 = jax.random.normal(jax.random.PRNGKey(0), (20, 256), dtype=jnp.float32)
    out3 = jax.block_until_ready(simple_layer_norm(x3))
    assert out3.shape == x3.shape and out3.dtype == x3.dtype
    assert jnp.max(jnp.abs(out3 - _reference(x3))) < 1e-5

    # 4) Large-F fallback path (feature-split two-pass, ragged last feature chunk).
    x4 = jax.random.normal(jax.random.PRNGKey(0), (16, 163840), dtype=jnp.float32)
    out4 = jax.block_until_ready(simple_layer_norm(x4))
    assert out4.shape == x4.shape and out4.dtype == x4.dtype
    assert jnp.max(jnp.abs(out4 - _reference(x4))) < 1e-3

    print("KERNEL_OK")
</pallas_src>

<mosaic_0001>
module attributes {stable_mosaic.version = 11 : i64} {
  func.func @_ln_kernel(%arg0: i32, %arg1: memref<2x1024xf32, #tpu.memory_space<vmem>>, %arg2: memref<2x1024xf32, #tpu.memory_space<vmem>>) attributes {dimension_semantics = [#tpu.dimension_semantics<parallel>], iteration_bounds = array<i64: 1>, scalar_prefetch = 0 : i64, scratch_operands = 0 : i64, tpu.core_type = #tpu.core_type<tc>, window_params = [{transform_indices = @transform_0, window_bounds = array<i64: 2, 1024>}, {transform_indices = @transform_1, window_bounds = array<i64: 2, 1024>}]} {
    %c0 = arith.constant 0 : index
    %c0_0 = arith.constant 0 : index
    %0 = vector.load %arg1[%c0, %c0_0] : memref<2x1024xf32, #tpu.memory_space<vmem>>, vector<2x1024xf32>
    %cst = arith.constant dense<0.000000e+00> : vector<2xf32>
    %1 = vector.multi_reduction <add>, %0, %cst [1] : vector<2x1024xf32> to vector<2xf32>
    %2 = vector.shape_cast %1 : vector<2xf32> to vector<2x1xf32>
    %cst_1 = arith.constant 9.765625E-4 : f32
    %3 = vector.broadcast %cst_1 : f32 to vector<2x1xf32>
    %4 = arith.mulf %2, %3 : vector<2x1xf32>
    %5 = vector.broadcast %4 : vector<2x1xf32> to vector<2x1024xf32>
    %6 = arith.subf %0, %5 : vector<2x1024xf32>
    %7 = arith.mulf %6, %6 : vector<2x1024xf32>
    %cst_2 = arith.constant dense<0.000000e+00> : vector<2xf32>
    %8 = vector.multi_reduction <add>, %7, %cst_2 [1] : vector<2x1024xf32> to vector<2xf32>
    %9 = vector.shape_cast %8 : vector<2xf32> to vector<2x1xf32>
    %cst_3 = arith.constant 9.765625E-4 : f32
    %10 = vector.broadcast %cst_3 : f32 to vector<2x1xf32>
    %11 = arith.mulf %9, %10 : vector<2x1xf32>
    %cst_4 = arith.constant 9.99999974E-6 : f32
    %12 = vector.broadcast %cst_4 : f32 to vector<2x1xf32>
    %13 = arith.addf %11, %12 : vector<2x1xf32>
    %14 = math.rsqrt %13 : vector<2x1xf32>
    %15 = vector.broadcast %14 : vector<2x1xf32> to vector<2x1024xf32>
    %16 = arith.mulf %6, %15 : vector<2x1024xf32>
    %c0_5 = arith.constant 0 : index
    %c0_6 = arith.constant 0 : index
    %17 = vector.load %arg2[%c0_5, %c0_6] : memref<2x1024xf32, #tpu.memory_space<vmem>>, vector<2x1024xf32>
    tpu.vector_store %arg2[%c0_5, %c0_6], %16 {strides = array<i32>} : memref<2x1024xf32, #tpu.memory_space<vmem>>, vector<2x1024xf32>,
    return
  }
  func.func @transform_0(%arg0: i32) -> (i32, i32) {
    %c0_i32 = arith.constant 0 : i32
    %c0_i32_0 = arith.constant 0 : i32
    return %arg0, %c0_i32 : i32, i32
  }
  func.func @transform_1(%arg0: i32) -> (i32, i32) {
    %c0_i32 = arith.constant 0 : i32
    %c0_i32_0 = arith.constant 0 : i32
    return %arg0, %c0_i32 : i32, i32
  }
}

</mosaic_0001>

<bundles_post_ra>
// kernel: tpu_custom_call.1
= control target key start
LH: loop header
LB: loop body
LE: loop exit
PB: predicated region body
PF: predicated region fallthrough
CT: control target
= control target key end

     0   :  { %6 = vsyncpa [#allocation3], 0  ;;  %s301_s0 = inlined_call_operand.hbm [shape: f32[2,1024], index: 0, kind: input, shape index: {}]   ;;  %s302_s1 = inlined_call_operand.hbm [shape: f32[2,1024], index: 1, kind: output, shape index: {}]  }
   0x1   :  { %7 = vsyncpa [#allocation4], 0  ;;  %s247_s6 = smov [#allocation2]   ;;  %s199_s10 = scalar_lea.hbm %s301_s0, 256 }
   0x2   :  { %s14_s7 = sshll.u32 %s247_s6, 4  ;;  %p200_p0 = scmp.ne.s32.totalorder %s301_s0, %s199_s10  ;;  %s15_s7 = int_to_ptr.vmem [resolvable:$true] %s14_s7 }
   0x3   :  { %p203_p1 = scmp.lt.u32.totalorder %s199_s10, %s301_s0 }
   0x5   :  { %p205_p2 = pnand %p203_p1, %p200_p0 }
   0x7   :  { %208 = shalt.err (!%p205_p2)
}
   0x8   :  { %s209_s15 = scalar_lea.vmem %s15_s7, 256  ;;  %p214_p4 = scmp.lt.s32.totalorder %s15_s7, %s15_s7 }
   0x9   :  { %p210_p3 = scmp.ne.s32.totalorder %s15_s7, %s209_s15  ;;  %p215_p5 = scmp.lt.s32.totalorder %s209_s15, %s209_s15 }
   0xb   :  { %p216_p6 = por %p215_p5, %p214_p4 }
   0xd   :  { %p217_p7 = pnand %p216_p6, %p210_p3 }
   0xf   :  { %220 = shalt.err (!%p217_p7)
}
  0x10   :  { %17 = dma.hbm_to_vmem [thread:$0]  %s301_s0, 256, %s15_s7, [#allocation3]  }
  0x11   :  { %243 = dma.done.wait [#allocation3], 256  }
  0x12   :  { %244 = vsyncadd [#allocation3], 4294967040  ;;  %v29_v0 = vlaneseq  ;;  %v248_v1 = vmov 1983009808   ;;  %v21_v6 = vld [vmem:[#allocation2] sm:$0xff]  ;;  %v22_v7 = vld [vmem:[#allocation2 + $0x8] sm:$0xff] }
  0x13   :  { %v27_v2 = vunpack.c.l.s4 %v248_v1  ;;  %v25_v8 = vcombine.high %v21_v6, %v21_v6  ;;  %vm67_vm0 = vcmask 1041408   ;;  %v42_v12 = vcombine.high %v22_v7, %v22_v7  ;;  %s250_s0 = smov [#allocation5]  }
  0x14   :  { %v30_v3 = vshrl.u32 %v29_v0, 7  ;;  %v249_v33 = vmov 269488144   ;;  %s182_s18 = sshll.u32 %s250_s0, 4  ;;  %s183_s18 = int_to_ptr.vmem [resolvable:$true] %s182_s18 }
  0x15   :  { %v28_v4 = vunpack.c.0.s8 %v27_v2  ;;  %v88_v34 = vunpack.c.l.s4 %v249_v33  ;;  %s221_s19 = scalar_lea.vmem %s183_s18, 256  ;;  %p226_p9 = scmp.lt.s32.totalorder %s183_s18, %s183_s18 }
  0x16   :  { %p222_p8 = scmp.ne.s32.totalorder %s183_s18, %s221_s19  ;;  %p227_p10 = scmp.lt.s32.totalorder %s221_s19, %s221_s19 }
  0x17   :  { %v31_v5 = vsub.s32 %v28_v4, %v30_v3  ;;  %v89_v35 = vunpack.c.0.s8 %v88_v34 }
  0x18   :  { %p228_p11 = por %p227_p10, %p226_p9 }
  0x19   :  { %v32_v9 = vrot.slane %v21_v6, %v31_v5  ;;  %v39_v10 = vrot.slane %v25_v8, %v31_v5  ;;  %v49_v13 = vrot.slane %v22_v7, %v31_v5  ;;  %v56_v19 = vrot.slane %v42_v12, %v31_v5 }
  0x1a   :  { %v92_v36 = vsub.s32 %v89_v35, %v30_v3  ;;  %p229_p12 = pnand %p228_p11, %p222_p8 }
  0x1b   :  { %v40_v11 = vcombine.high %v32_v9, %v32_v9  ;;  %v68_v14 = vsel %vm67_vm0, %v32_v9, 0.0  ;;  %v41_v15 = vcombine.high %v39_v10, %v39_v10  ;;  %v71_v17 = vsel %vm67_vm0, %v39_v10, 0.0 }
  0x1c   :  { %v57_v20 = vcombine.high %v49_v13, %v49_v13  ;;  %v75_v23 = vsel %vm67_vm0, %v49_v13, 0.0  ;;  %v58_v25 = vcombine.high %v56_v19, %v56_v19  ;;  %v79_v28 = vsel %vm67_vm0, %v56_v19, 0.0 }
  0x1d   :  { %v69_v16 = vsel %vm67_vm0, %v40_v11, 0.0  ;;  %v73_v21 = vsel %vm67_vm0, %v41_v15, 0.0 }
  0x1e   :  { %v70_v18 = vadd.f32 %v69_v16, %v68_v14  ;;  %v77_v26 = vsel %vm67_vm0, %v57_v20, 0.0  ;;  %v81_v30 = vsel %vm67_vm0, %v58_v25, 0.0 }
  0x20   :  { %v72_v22 = vadd.f32 %v71_v17, %v70_v18 }
  0x22   :  { %v74_v24 = vadd.f32 %v73_v21, %v72_v22 }
  0x24   :  { %v76_v27 = vadd.f32 %v75_v23, %v74_v24 }
  0x26   :  { %v78_v29 = vadd.f32 %v77_v26, %v76_v27 }
  0x28   :  { %v80_v31 = vadd.f32 %v79_v28, %v78_v29 }
  0x2a   :  { %v82_v32 = vadd.f32 %v81_v30, %v80_v31 }
  0x2c   :  { %83 = vadd.xlane.f32.xlu0 %v82_v32 }
  0xb9   :  { %v84_v37 = vpop.xlane.xlu0 %83 }
  0xba   :  { %v85_v38 = vmul.f32 0.0009765625, %v84_v37 }
  0xbc   :  { %v93_v39 = vrot.slane %v85_v38, %v92_v36 }
  0xbe   :  { %v95_v40 = vsub.f32 %v21_v6, %v93_v39  ;;  %v96_v41 = vsub.f32 %v22_v7, %v93_v39 }
  0xc0   :  { %v97_v42 = vmul.f32 %v95_v40, %v95_v40  ;;  %v98_v43 = vmul.f32 %v96_v41, %v96_v41 }
  0xc2   :  { %v101_v44 = vcombine.high %v97_v42, %v97_v42  ;;  %v108_v45 = vrot.slane %v97_v42, %v31_v5  ;;  %v125_v48 = vrot.slane %v98_v43, %v31_v5  ;;  %v118_v52 = vcombine.high %v98_v43, %v98_v43 }
  0xc4   :  { %v115_v46 = vrot.slane %v101_v44, %v31_v5  ;;  %v116_v47 = vcombine.high %v108_v45, %v108_v45  ;;  %v143_v49 = vsel %vm67_vm0, %v108_v45, 0.0  ;;  %v132_v56 = vrot.slane %v118_v52, %v31_v5 }
  0xc5   :  { %v133_v57 = vcombine.high %v125_v48, %v125_v48  ;;  %v150_v60 = vsel %vm67_vm0, %v125_v48, 0.0 }
  0xc6   :  { %v144_v50 = vsel %vm67_vm0, %v116_v47, 0.0  ;;  %v117_v51 = vcombine.high %v115_v46, %v115_v46  ;;  %v146_v54 = vsel %vm67_vm0, %v115_v46, 0.0  ;;  %v134_v62 = vcombine.high %v132_v56, %v132_v56 }
  0xc7   :  { %v145_v53 = vadd.f32 %v144_v50, %v143_v49  ;;  %v152_v63 = vsel %vm67_vm0, %v133_v57, 0.0  ;;  %v154_v1 = vsel %vm67_vm0, %v132_v56, 0.0 }
  0xc8   :  { %v148_v58 = vsel %vm67_vm0, %v117_v51, 0.0  ;;  %v156_v3 = vsel %vm67_vm0, %v134_v62, 0.0 }
  0xc9   :  { %v147_v55 = vadd.f32 %v146_v54, %v145_v53 }
  0xcb   :  { %v149_v59 = vadd.f32 %v148_v58, %v147_v55 }
  0xcd   :  { %v151_v61 = vadd.f32 %v150_v60, %v149_v59 }
  0xcf   :  { %v153_v0 = vadd.f32 %v152_v63, %v151_v61 }
  0xd1   :  { %v155_v2 = vadd.f32 %v154_v1, %v153_v0 }
  0xd3   :  { %v157_v4 = vadd.f32 %v156_v3, %v155_v2 }
  0xd5   :  { %158 = vadd.xlane.f32.xlu0 %v157_v4 }
 0x162   :  { %v159_v6 = vpop.xlane.xlu0 %158 }
 0x163   :  { %v160_v5 = vmul.f32 0.0009765625, %v159_v6 }
 0x165   :  { %v161_v7 = vadd.f32 1e-05, %v160_v5 }
 0x167   :  { %197 = vrsqrt.f32 %v161_v7 }
 0x171   :  { %v198_v8 = vpop.eup %197 }
 0x172   :  { %v170_v9 = vrot.slane %v198_v8, %v92_v36 }
 0x174   :  { %v172_v10 = vmul.f32 %v170_v9, %v95_v40  ;;  %v173_v11 = vmul.f32 %v170_v9, %v96_v41 }
 0x176   :  { %174 = vst [vmem:[#allocation5] sm:$0xff] %v172_v10  ;;  %175 = vst [vmem:[#allocation5 + $0x8] sm:$0xff] %v173_v11 }
 0x177   :  { %232 = shalt.err (!%p229_p12)
}
 0x178   :  { %s233_s22 = scalar_lea.hbm %s302_s1, 256 }
 0x179   :  { %p234_p13 = scmp.ne.s32.totalorder %s302_s1, %s233_s22  ;;  %p237_p0 = scmp.lt.u32.totalorder %s233_s22, %s302_s1 }
 0x17b   :  { %p239_p1 = pnand %p237_p0, %p234_p13 }
 0x17d   :  { %242 = shalt.err (!%p239_p1)
}
 0x17e   :  { %185 = dma.vmem_to_hbm [thread:$0]  %s183_s18, 256, %s302_s1, [#allocation4]  }
 0x17f   :  { %245 = dma.done.wait [#allocation4], 256  }
 0x180   :  { %246 = vsyncadd [#allocation4], 4294967040 }
 0x181   :  { %189 = vsyncpa [#allocation3], 1 }
 0x182   :  { %190 = vsyncpa [#allocation4], 1 }

</bundles_post_ra>
